<compile_context>
chip_gen: v7x
topology: tpu7x:2x2x1
jax: 0.10.0
libtpu: 0.0.40
codegen_flags: <defaults>
</compile_context>

<pallas_src>
import math

import jax
import jax.numpy as jnp
from jax.experimental import pallas as pl
from jax.experimental.pallas import tpu as pltpu

INF = 1000000.0  # PyTorch module's training-mode offset


def _esoftmax_kernel(x_ref, o_ref):
    """One (block_rows, D) tile of ESoftmax along the last (lane) axis.

    Fused form of softmax(x - where(x < mean(x), INF/inf, 0)):
    masked entries are zeroed directly instead of exp(x - INF - max).
    Bit-identical to the PyTorch module for |x| <~ 1e5 in training mode
    (exp underflows to exactly 0) and exact in eval mode.
    # TODO(synk): if inputs can exceed ~1e5 in training mode, fall back to the
    # explicit x - INF path for strict bit-faithfulness.
    """
    x = x_ref[...].astype(jnp.float32)
    d = x.shape[-1]

    # Both XLU reductions back-to-back on the same live f32 tile.
    row_sum = jnp.sum(x, axis=-1, keepdims=True)
    row_max = jnp.max(x, axis=-1, keepdims=True)
    row_mean = row_sum * (1.0 / float(d))

    # Numerator: exp(x - max) for kept entries, exactly 0 for masked entries.
    e = jnp.where(x < row_mean, 0.0, jnp.exp(x - row_max))
    s = jnp.sum(e, axis=-1, keepdims=True)
    o_ref[...] = (e * pl.reciprocal(s, approx=False)).astype(o_ref.dtype)


def _round_up(n: int, m: int) -> int:
    return -(-n // m) * m


def _device_config() -> dict:
    """Generation-aware compute-tile budget / scoped-VMEM limit / TC count."""
    kind = ""
    try:
        kind = jax.devices()[0].device_kind.lower()
    except Exception:  # pragma: no cover - defensive, e.g. interpret mode
        pass
    if "v7" in kind:
        # 64 MiB VMEM/TC, ~3.2 TB/s HBM, 2 TensorCores per chip.
        return {"budget": 6 << 20, "vmem_limit": 48 << 20, "multi_tc": True}
    if "v6" in kind:
        # 128 MiB VMEM, ~1.4 TB/s HBM; ~85% of roofline already at 1-4 MiB tiles.
        return {"budget": 4 << 20, "vmem_limit": 48 << 20, "multi_tc": False}
    if "v5" in kind and ("lite" in kind or "v5e" in kind):
        # 16 MiB default scoped VMEM: keep the tile small and the limit modest.
        return {"budget": (3 << 20) // 2, "vmem_limit": 32 << 20, "multi_tc": False}
    # Unknown / other generations: conservative.
    return {"budget": 2 << 20, "vmem_limit": 32 << 20, "multi_tc": False}


def _choose_block_rows(B: int, D: int, itemsize: int,
                       budget_bytes: int, multi_tc: bool) -> int:
    """Row tile sized to an f32 compute budget, sublane-pack aligned."""
    # Sublane packing: 8 rows for 4-byte dtypes, 16 for bf16/f16, 32 for int8/fp8.
    pack = max(8, 8 * (4 // max(1, itemsize)))
    cap = max(pack, (budget_bytes // (D * 4)) // pack * pack)
    # Never bigger than the (pack-rounded) batch.
    cap = min(cap, _round_up(B, pack))
    if multi_tc:
        nb = -(-B // cap)
        if nb == 1 and B >= 2 * pack and cap * D * 4 >= (1 << 20):
            # One big block: split it so both TensorCores get work.
            cap = _round_up(-(-B // 2), pack)
        elif nb > 1 and nb % 2 == 1:
            # Prefer an even number of blocks for the 2-core parallel split.
            cap = _round_up(-(-B // (nb + 1)), pack)
    return cap


def esoftmax(x: jax.Array, dim: int = -1, training: bool = True) -> jax.Array:
    """ESoftmax over `dim`. Output dtype == input dtype.

    `training` is accepted for API parity with the PyTorch module; the fused
    kernel produces identical results for both modes (masked entries are
    exactly zero) in the normal |x| regime.
    """
    del training  # see _esoftmax_kernel docstring
    ndim = x.ndim
    dim = dim % ndim

    # TODO(synk): for dim != -1 this round-trips through two HBM transposes;
    # a sublane-reduction kernel variant would avoid the moveaxis copies.
    x_moved = jnp.moveaxis(x, dim, -1) if dim != ndim - 1 else x
    lead_shape = x_moved.shape[:-1]
    D = x_moved.shape[-1]
    B = int(math.prod(lead_shape)) if lead_shape else 1
    x2 = x_moved.reshape(B, D)

    cfg = _device_config()
    itemsize = jnp.dtype(x.dtype).itemsize

    # D is never tiled: guard against VMEM blowup for vocab-sized D.
    # TODO(synk): add a D-tiled online variant (running mean + running max/sum)
    # with the reduction axis last in the grid for very large D.
    min_footprint = 7 * 8 * D * 4  # smallest block: DB'd in+out + f32 temps
    if min_footprint > cfg["vmem_limit"]:
        raise NotImplementedError(
            f"ESoftmax Pallas kernel: reduction dim D={D} too large for the "
            "untiled-D kernel; needs an online D-tiled variant.")

    block_rows = _choose_block_rows(B, D, itemsize, cfg["budget"], cfg["multi_tc"])
    n_blocks = -(-B // block_rows)  # ragged last block: Pallas masks OOB writes

    out = pl.pallas_call(
        _esoftmax_kernel,
        out_shape=jax.ShapeDtypeStruct((B, D), x.dtype),
        grid_spec=pltpu.PrefetchScalarGridSpec(
            num_scalar_prefetch=0,
            grid=(n_blocks,),
            in_specs=[pl.BlockSpec((block_rows, D), lambda i: (i, 0))],
            out_specs=pl.BlockSpec((block_rows, D), lambda i: (i, 0)),
        ),
        compiler_params=pltpu.CompilerParams(
            dimension_semantics=("parallel",),
            vmem_limit_bytes=cfg["vmem_limit"],
        ),
        cost_estimate=pl.CostEstimate(
            flops=5 * B * D,
            transcendentals=B * D,
            bytes_accessed=2 * B * D * itemsize,
        ),
    )(x2)

    out = out.reshape(lead_shape + (D,))
    if dim != ndim - 1:
        out = jnp.moveaxis(out, -1, dim)
    return out


def _reference(x: jnp.ndarray, dim: int = -1, training: bool = True) -> jnp.ndarray:
    """Pure-JAX mirror of the PyTorch esoftmax for verification."""
    xf = x.astype(jnp.float32)
    mean = jnp.mean(xf, axis=dim, keepdims=True)
    offset_val = INF if training else float("inf")
    offset = jnp.where(xf < mean, offset_val, 0.0)
    y = xf - offset
    y = y - jnp.max(y, axis=dim, keepdims=True)
    e = jnp.exp(y)
    return (e / jnp.sum(e, axis=dim, keepdims=True)).astype(x.dtype)


if __name__ == "__main__":
    key = jax.random.PRNGKey(0)
    # Small shape consistent with the module: batch=2, seq=8, hidden=128,
    # softmax over the last (hidden) axis.
    B, S, D = 2, 8, 128
    x = jax.random.normal(key, (B, S, D), dtype=jnp.float32) * 2.0

    out = esoftmax(x, dim=-1, training=True)
    out = jax.block_until_ready(out)

    ref = _reference(x, dim=-1, training=True)

    max_err = float(jnp.max(jnp.abs(out - ref)))
    assert max_err < 1e-5, f"max abs err {max_err}"

    # Probabilities sum to ~1 along the reduced axis.
    row_sums = jnp.sum(out, axis=-1)
    assert bool(jnp.all(jnp.abs(row_sums - 1.0) < 1e-5))

    # Below-mean entries are exactly zeroed out.
    mask = x < jnp.mean(x, axis=-1, keepdims=True)
    assert float(jnp.max(jnp.where(mask, out, 0.0))) == 0.0

    print("KERNEL_OK")
</pallas_src>

<mosaic_0001>
module attributes {stable_mosaic.version = 11 : i64} {
  func.func @_esoftmax_kernel(%arg0: i32, %arg1: memref<16x128xf32, #tpu.memory_space<vmem>>, %arg2: memref<16x128xf32, #tpu.memory_space<vmem>>) attributes {dimension_semantics = [#tpu.dimension_semantics<parallel>], iteration_bounds = array<i64: 1>, scalar_prefetch = 0 : i64, scratch_operands = 0 : i64, tpu.core_type = #tpu.core_type<tc>, window_params = [{transform_indices = @transform_0, window_bounds = array<i64: 16, 128>}, {transform_indices = @transform_1, window_bounds = array<i64: 16, 128>}]} {
    %c0 = arith.constant 0 : index
    %c0_0 = arith.constant 0 : index
    %0 = vector.load %arg1[%c0, %c0_0] : memref<16x128xf32, #tpu.memory_space<vmem>>, vector<16x128xf32>
    %cst = arith.constant dense<0.000000e+00> : vector<16xf32>
    %1 = vector.multi_reduction <add>, %0, %cst [1] : vector<16x128xf32> to vector<16xf32>
    %2 = vector.shape_cast %1 : vector<16xf32> to vector<16x1xf32>
    %cst_1 = arith.constant dense<0xFF800000> : vector<16xf32>
    %3 = vector.multi_reduction <maximumf>, %0, %cst_1 [1] : vector<16x128xf32> to vector<16xf32>
    %4 = vector.shape_cast %3 : vector<16xf32> to vector<16x1xf32>
    %cst_2 = arith.constant 7.812500e-03 : f32
    %5 = vector.broadcast %cst_2 : f32 to vector<16x1xf32>
    %6 = arith.mulf %2, %5 : vector<16x1xf32>
    %7 = vector.broadcast %6 : vector<16x1xf32> to vector<16x128xf32>
    %8 = arith.cmpf olt, %0, %7 : vector<16x128xf32>
    %9 = vector.broadcast %4 : vector<16x1xf32> to vector<16x128xf32>
    %10 = arith.subf %0, %9 : vector<16x128xf32>
    %11 = math.exp %10 : vector<16x128xf32>
    %cst_3 = arith.constant 0.000000e+00 : f32
    %12 = vector.broadcast %cst_3 : f32 to vector<16x128xf32>
    %13 = arith.select %8, %12, %11 : vector<16x128xi1>, vector<16x128xf32>
    %cst_4 = arith.constant dense<0.000000e+00> : vector<16xf32>
    %14 = vector.multi_reduction <add>, %13, %cst_4 [1] : vector<16x128xf32> to vector<16xf32>
    %15 = vector.shape_cast %14 : vector<16xf32> to vector<16x1xf32>
    %16 = tpu.reciprocal %15 : vector<16x1xf32> -> vector<16x1xf32>
    %17 = vector.broadcast %16 : vector<16x1xf32> to vector<16x128xf32>
    %18 = arith.mulf %13, %17 : vector<16x128xf32>
    %c0_5 = arith.constant 0 : index
    %c0_6 = arith.constant 0 : index
    %19 = vector.load %arg2[%c0_5, %c0_6] : memref<16x128xf32, #tpu.memory_space<vmem>>, vector<16x128xf32>
    tpu.vector_store %arg2[%c0_5, %c0_6], %18 {strides = array<i32>} : memref<16x128xf32, #tpu.memory_space<vmem>>, vector<16x128xf32>,
    return
  }
  func.func @transform_0(%arg0: i32) -> (i32, i32) {
    %c0_i32 = arith.constant 0 : i32
    %c0_i32_0 = arith.constant 0 : i32
    return %arg0, %c0_i32 : i32, i32
  }
  func.func @transform_1(%arg0: i32) -> (i32, i32) {
    %c0_i32 = arith.constant 0 : i32
    %c0_i32_0 = arith.constant 0 : i32
    return %arg0, %c0_i32 : i32, i32
  }
}

</mosaic_0001>

<bundles_post_ra>
// kernel: tpu_custom_call.1
= control target key start
LH: loop header
LB: loop body
LE: loop exit
PB: predicated region body
PF: predicated region fallthrough
CT: control target
= control target key end

     0   :  { %6 = vsyncpa [#allocation3], 0  ;;  %s176_s0 = inlined_call_operand.hbm [shape: f32[16,128], index: 0, kind: input, shape index: {}]   ;;  %s177_s1 = inlined_call_operand.hbm [shape: f32[16,128], index: 1, kind: output, shape index: {}]  }
   0x1   :  { %7 = vsyncpa [#allocation4], 0  ;;  %s132_s6 = smov [#allocation2]   ;;  %s84_s10 = scalar_lea.hbm %s176_s0, 256 }
   0x2   :  { %s13_s7 = sshll.u32 %s132_s6, 4  ;;  %p85_p0 = scmp.ne.s32.totalorder %s176_s0, %s84_s10  ;;  %s14_s7 = int_to_ptr.vmem [resolvable:$true] %s13_s7 }
   0x3   :  { %p88_p1 = scmp.lt.u32.totalorder %s84_s10, %s176_s0 }
   0x5   :  { %p90_p2 = pnand %p88_p1, %p85_p0 }
   0x7   :  { %93 = shalt.err (!%p90_p2)
}
   0x8   :  { %s94_s15 = scalar_lea.vmem %s14_s7, 256  ;;  %p99_p4 = scmp.lt.s32.totalorder %s14_s7, %s14_s7 }
   0x9   :  { %p95_p3 = scmp.ne.s32.totalorder %s14_s7, %s94_s15  ;;  %p100_p5 = scmp.lt.s32.totalorder %s94_s15, %s94_s15 }
   0xb   :  { %p101_p6 = por %p100_p5, %p99_p4 }
   0xd   :  { %p102_p7 = pnand %p101_p6, %p95_p3 }
   0xf   :  { %105 = shalt.err (!%p102_p7)
}
  0x10   :  { %s133_s16 = smov 128   ;;  %s134_s17 = smov 8  }
  0x11   :  { %19 = dma.hbm_to_vmem [thread:$0]  %s176_s0, 256, %s14_s7, [#allocation3], %s133_s16, %s133_s16, %s134_s17  }
  0x12   :  { %128 = dma.done.wait [#allocation3], 256  }
  0x13   :  { %129 = vsyncadd [#allocation3], 4294967040  ;;  %v23_v0 = vld [vmem:[#allocation2] sm:$0xff]  ;;  %v24_v1 = vld [vmem:[#allocation2 + $0x8] sm:$0xff]  ;;  %s135_s0 = smov [#allocation5]  }
  0x14   :  { %29 = vmax.xlane.f32.xlu0 %v23_v0  ;;  %25 = vadd.xlane.f32.xlu1 %v23_v0  ;;  %s60_s20 = sshll.u32 %s135_s0, 4  ;;  %s61_s20 = int_to_ptr.vmem [resolvable:$true] %s60_s20 }
  0x15   :  { %s106_s21 = scalar_lea.vmem %s61_s20, 256  ;;  %p111_p9 = scmp.lt.s32.totalorder %s61_s20, %s61_s20 }
  0x16   :  { %p107_p8 = scmp.ne.s32.totalorder %s61_s20, %s106_s21  ;;  %p112_p10 = scmp.lt.s32.totalorder %s106_s21, %s106_s21 }
  0x18   :  { %31 = vmax.xlane.f32.xlu0 %v24_v1  ;;  %27 = vadd.xlane.f32.xlu1 %v24_v1  ;;  %p113_p11 = por %p112_p10, %p111_p9 }
  0x1a   :  { %p114_p12 = pnand %p113_p11, %p107_p8 }
  0xa1   :  { %v30_v2 = vpop.xlane.xlu0 %29  ;;  %v26_v6 = vpop.xlane.xlu1 %25 }
  0xa2   :  { %v37_v3 = vsub.f32 %v23_v0, %v30_v2  ;;  %v33_v9 = vmul.f32 0.0078125, %v26_v6 }
  0xa4   :  { %v39_v4 = vmul.f32 1.442695, %v37_v3  ;;  %vm35_vm0 = vcmp.lt.f32.partialorder %v23_v0, %v33_v9 }
  0xa5   :  { %v32_v5 = vpop.xlane.xlu0 %31  ;;  %v28_v10 = vpop.xlane.xlu1 %27 }
  0xa6   :  { %76 = vpow2.f32 %v39_v4  ;;  %v38_v7 = vsub.f32 %v24_v1, %v32_v5  ;;  %v34_v11 = vmul.f32 0.0078125, %v28_v10 }
  0xa8   :  { %v41_v8 = vmul.f32 1.442695, %v38_v7  ;;  %vm36_vm1 = vcmp.lt.f32.partialorder %v24_v1, %v34_v11 }
  0xaa   :  { %78 = vpow2.f32 %v41_v8 }
  0xb0   :  { %v77_v12 = vpop.eup %76 }
  0xb1   :  { %v43_v13 = vsel %vm35_vm0, 0.0, %v77_v12 }
  0xb2   :  { %45 = vadd.xlane.f32.xlu0 %v43_v13 }
  0xb4   :  { %v79_v14 = vpop.eup %78 }
  0xb5   :  { %v44_v15 = vsel %vm36_vm1, 0.0, %v79_v14 }
  0xb6   :  { %47 = vadd.xlane.f32.xlu1 %v44_v15 }
 0x13f   :  { %v46_v16 = vpop.xlane.xlu0 %45 }
 0x140   :  { %80 = vrcp.f32 %v46_v16 }
 0x143   :  { %v48_v17 = vpop.xlane.xlu1 %47 }
 0x144   :  { %82 = vrcp.f32 %v48_v17 }
 0x14a   :  { %v81_v18 = vpop.eup %80 }
 0x14b   :  { %v51_v19 = vmul.f32 %v81_v18, %v43_v13 }
 0x14d   :  { %53 = vst [vmem:[#allocation5] sm:$0xff] %v51_v19 }
 0x14e   :  { %v83_v20 = vpop.eup %82 }
 0x14f   :  { %v52_v21 = vmul.f32 %v83_v20, %v44_v15 }
 0x151   :  { %54 = vst [vmem:[#allocation5 + $0x8] sm:$0xff] %v52_v21 }
 0x152   :  { %117 = shalt.err (!%p114_p12)
}
 0x153   :  { %s118_s24 = scalar_lea.hbm %s177_s1, 256 }
 0x154   :  { %p119_p13 = scmp.ne.s32.totalorder %s177_s1, %s118_s24  ;;  %p122_p0 = scmp.lt.u32.totalorder %s118_s24, %s177_s1 }
 0x156   :  { %p124_p1 = pnand %p122_p0, %p119_p13 }
 0x158   :  { %127 = shalt.err (!%p124_p1)
}
 0x159   :  { %66 = dma.vmem_to_hbm [thread:$0]  %s61_s20, 256, %s177_s1, [#allocation4], %s133_s16, %s133_s16, %s134_s17  }
 0x15a   :  { %130 = dma.done.wait [#allocation4], 256  }
 0x15b   :  { %131 = vsyncadd [#allocation4], 4294967040 }
 0x15c   :  { %70 = vsyncpa [#allocation3], 1 }
 0x15d   :  { %71 = vsyncpa [#allocation4], 1 }

</bundles_post_ra>
